<compile_context>
chip_gen: v6e
topology: v6e:2x2x1
jax: 0.10.0
libtpu: 0.0.40
codegen_flags: <defaults>
</compile_context>

<pallas_src>
import math
from functools import partial

import jax
import jax.numpy as jnp
from jax import lax
from jax.experimental import pallas as pl
from jax.experimental.pallas import tpu as pltpu


def _erf(x):
    """Abramowitz & Stegun 7.1.26 erf approximation (max abs err ~1.5e-7).

    Uses only mul/add/select and one jnp.exp (EUP), all with guaranteed
    Mosaic lowerings; error is far below the 1e-4 comparison tolerance.
    """
    a1, a2, a3, a4, a5 = (0.254829592, -0.284496736, 1.421413741,
                          -1.453152027, 1.061405429)
    p = 0.3275911
    ax = jnp.abs(x)
    t = 1.0 / (1.0 + p * ax)
    poly = ((((a5 * t + a4) * t + a3) * t + a2) * t + a1) * t
    y = 1.0 - poly * jnp.exp(-ax * ax)
    return jnp.where(x >= 0.0, y, -y)


def conv_bn_gelu_kernel(x_ref, w_ref, bias_ref, gamma_ref, beta_ref, o_ref,
                        xp_ref, *, kernel_size, dilation, padding, l_out, eps):
    n, c_in, l = x_ref.shape          # NCL layout: L on lanes, C_in on sublanes
    c_out = w_ref.shape[1]            # w_ref: (K, C_out, C_in)

    # ---- Zero padding along L, once, into a VMEM scratch (no lane-offset
    #      concatenates, no HBM round trips). ----
    xp_ref[...] = jnp.zeros(xp_ref.shape, xp_ref.dtype)
    xp_ref[:, :, pl.ds(padding, l)] = x_ref[...]

    # ---- Conv1d: K per-tap batched (over N) matmuls accumulated in f32.
    #      The batch dim stays a leading axis (never flattened onto lanes), so
    #      the MXU result is already (N, C_out, L_out): no transposes, no
    #      im2col concats, no output rebuild. ----
    y = jnp.zeros((n, c_out, l_out), jnp.float32)
    for k in range(kernel_size):                           # static unroll, K small
        tap = xp_ref[:, :, pl.ds(k * dilation, l_out)]     # (N, C_in, L_out)
        w_k = jnp.broadcast_to(w_ref[k], (n, c_out, c_in))  # (N, C_out, C_in)
        y = y + lax.dot_general(
            w_k, tap,
            dimension_numbers=(((2,), (1,)), ((0,), (0,))),
            preferred_element_type=jnp.float32)
    y = y + bias_ref[...].astype(jnp.float32)              # (1, C_out, 1) bcast

    # ---- BatchNorm1d, training-mode batch statistics (biased variance),
    #      folded to one per-channel scale/shift: z = y*s + t. ----
    # TODO(synk): running_mean/running_var updates are a training-only side
    # effect with no forward-output impact; not modeled here.
    inv_m = 1.0 / float(n * l_out)
    mean = jnp.sum(jnp.sum(y, axis=2, keepdims=True),
                   axis=0, keepdims=True) * inv_m           # (1, C_out, 1)
    diff = y - mean
    var = jnp.sum(jnp.sum(diff * diff, axis=2, keepdims=True),
                  axis=0, keepdims=True) * inv_m             # (1, C_out, 1)
    s = gamma_ref[...].astype(jnp.float32) * lax.rsqrt(var + eps)
    t = beta_ref[...].astype(jnp.float32) - mean * s
    z = y * s + t

    # ---- GELU (exact, erf-based — torch.nn.GELU() default). ----
    # TODO(synk): switch to the tanh form (single EUP op) only if approximate
    # GELU is acceptable downstream.
    z = 0.5 * z * (1.0 + _erf(z * (1.0 / math.sqrt(2.0))))

    o_ref[...] = z.astype(o_ref.dtype)


def custom_1d_cnn(x_ncl, w_oik, bias, gamma, beta, *, padding, dilation):
    """x_ncl: (N, C_in, L); w_oik: (C_out, C_in, K) — PyTorch layouts, unchanged."""
    n, c_in, l = x_ncl.shape
    c_out, _, k = w_oik.shape
    l_out = l + 2 * padding - dilation * (k - 1)

    # Parameter-only prep (a few hundred bytes, constant-foldable under jit):
    # per-tap weight stack (K, C_out, C_in) and (1, C_out, 1) broadcast shapes.
    # Dtypes are left untouched so bf16 weights/activations would hit the MXU
    # natively; only BN/GELU math is forced to f32 inside the kernel.
    w_taps = jnp.transpose(w_oik, (2, 0, 1))
    b3 = bias.reshape(1, c_out, 1)
    g3 = gamma.reshape(1, c_out, 1)
    be3 = beta.reshape(1, c_out, 1)

    # TODO(synk): at realistic N/L/C this needs a BlockSpec grid over N*L_out
    # tiles (lane tiles >=128, "parallel" axis for v7x's 2 TensorCores) with a
    # two-pass / cross-tile BN reduction (stats must stay global over (N, L)),
    # plus an explicit vmem_limit_bytes budget (v5e: 16 MiB scoped default,
    # v7x: 64 MiB physical).  At this toy size a grid-less single invocation
    # is strictly cheaper (per-step overhead > total work).
    kern = partial(conv_bn_gelu_kernel, kernel_size=k, dilation=dilation,
                   padding=padding, l_out=l_out, eps=1e-5)
    return pl.pallas_call(
        kern,
        out_shape=jax.ShapeDtypeStruct((n, c_out, l_out), jnp.float32),
        in_specs=[pl.BlockSpec(memory_space=pltpu.MemorySpace.VMEM)] * 5,
        out_specs=pl.BlockSpec(memory_space=pltpu.MemorySpace.VMEM),
        scratch_shapes=[pltpu.VMEM((n, c_in, l + 2 * padding), x_ncl.dtype)],
    )(x_ncl, w_taps, b3, g3, be3)


def reference(x_ncl, w_oik, bias, gamma, beta, *, padding, dilation):
    out = lax.conv_general_dilated(
        x_ncl, w_oik, window_strides=(1,), padding=[(padding, padding)],
        rhs_dilation=(dilation,), dimension_numbers=("NCH", "OIH", "NCH"))
    out = out + bias[None, :, None]
    mean = out.mean(axis=(0, 2), keepdims=True)
    var = ((out - mean) ** 2).mean(axis=(0, 2), keepdims=True)
    y = (out - mean) / jnp.sqrt(var + 1e-5)
    y = y * gamma[None, :, None] + beta[None, :, None]
    return 0.5 * y * (1.0 + lax.erf(y / jnp.sqrt(2.0)))


if __name__ == "__main__":
    # Module config: custom1DCNN(input_channels=4, output_channels=8,
    #                            kernel_size=3, padding=2, dilation=2)
    N, C_IN, L = 2, 4, 16
    C_OUT, K, PAD, DIL = 8, 3, 2, 2

    key = jax.random.PRNGKey(0)
    kx, kw, kb = jax.random.split(key, 3)

    x = jax.random.normal(kx, (N, C_IN, L), dtype=jnp.float32)

    # nn.Conv1d default init range; BatchNorm1d defaults: gamma=1, beta=0.
    bound = 1.0 / math.sqrt(C_IN * K)
    w = jax.random.uniform(kw, (C_OUT, C_IN, K), jnp.float32, -bound, bound)
    b = jax.random.uniform(kb, (C_OUT,), jnp.float32, -bound, bound)
    gamma = jnp.ones((C_OUT,), jnp.float32)
    beta = jnp.zeros((C_OUT,), jnp.float32)

    out = custom_1d_cnn(x, w, b, gamma, beta, padding=PAD, dilation=DIL)
    out = jax.block_until_ready(out)

    ref = reference(x, w, b, gamma, beta, padding=PAD, dilation=DIL)
    assert out.shape == ref.shape == (N, C_OUT, L + 2 * PAD - DIL * (K - 1))
    err = jnp.max(jnp.abs(out - ref))
    assert jnp.allclose(out, ref, atol=1e-4, rtol=1e-4), f"max abs err {err}"

    print("KERNEL_OK")
</pallas_src>

<mosaic_0001>
module attributes {stable_mosaic.version = 11 : i64} {
  func.func @conv_bn_gelu_kernel(%arg0: memref<2x4x16xf32, #tpu.memory_space<vmem>>, %arg1: memref<3x8x4xf32, #tpu.memory_space<vmem>>, %arg2: memref<1x8x1xf32, #tpu.memory_space<vmem>>, %arg3: memref<1x8x1xf32, #tpu.memory_space<vmem>>, %arg4: memref<1x8x1xf32, #tpu.memory_space<vmem>>, %arg5: memref<2x8x16xf32, #tpu.memory_space<vmem>>, %arg6: memref<2x4x20xf32, #tpu.memory_space<vmem>>) attributes {dimension_semantics = [], scalar_prefetch = 0 : i64, scratch_operands = 1 : i64, tpu.core_type = #tpu.core_type<tc>} {
    %cst = arith.constant 0.000000e+00 : f32
    %0 = vector.broadcast %cst : f32 to vector<2x4x20xf32>
    %c0 = arith.constant 0 : index
    %c0_0 = arith.constant 0 : index
    %c0_1 = arith.constant 0 : index
    %1 = vector.load %arg6[%c0, %c0_0, %c0_1] : memref<2x4x20xf32, #tpu.memory_space<vmem>>, vector<2x4x20xf32>
    tpu.vector_store %arg6[%c0, %c0_0, %c0_1], %0 {strides = array<i32>} : memref<2x4x20xf32, #tpu.memory_space<vmem>>, vector<2x4x20xf32>,
    %c0_2 = arith.constant 0 : index
    %c0_3 = arith.constant 0 : index
    %c0_4 = arith.constant 0 : index
    %2 = vector.load %arg0[%c0_2, %c0_3, %c0_4] : memref<2x4x16xf32, #tpu.memory_space<vmem>>, vector<2x4x16xf32>
    %c0_5 = arith.constant 0 : index
    %c0_6 = arith.constant 0 : index
    %c2 = arith.constant 2 : index
    %3 = vector.load %arg6[%c0_5, %c0_6, %c2] : memref<2x4x20xf32, #tpu.memory_space<vmem>>, vector<2x4x16xf32>
    tpu.vector_store %arg6[%c0_5, %c0_6, %c2], %2 {strides = array<i32>} : memref<2x4x20xf32, #tpu.memory_space<vmem>>, vector<2x4x16xf32>,
    %cst_7 = arith.constant 0.000000e+00 : f32
    %4 = vector.broadcast %cst_7 : f32 to vector<2x8x16xf32>
    %c0_8 = arith.constant 0 : index
    %c0_9 = arith.constant 0 : index
    %c0_10 = arith.constant 0 : index
    %5 = vector.load %arg6[%c0_8, %c0_9, %c0_10] : memref<2x4x20xf32, #tpu.memory_space<vmem>>, vector<2x4x16xf32>
    %c0_11 = arith.constant 0 : index
    %c0_12 = arith.constant 0 : index
    %c0_13 = arith.constant 0 : index
    %6 = vector.load %arg1[%c0_11, %c0_12, %c0_13] : memref<3x8x4xf32, #tpu.memory_space<vmem>>, vector<1x8x4xf32>
    %7 = vector.shape_cast %6 : vector<1x8x4xf32> to vector<8x4xf32>
    %8 = vector.shape_cast %7 : vector<8x4xf32> to vector<1x8x4xf32>
    %9 = vector.broadcast %8 : vector<1x8x4xf32> to vector<2x8x4xf32>
    %cst_14 = arith.constant dense<0.000000e+00> : vector<2x8x16xf32>
    %10 = tpu.matmul %9, %5, %cst_14 {dimension_numbers = #tpu.dot_dimension_numbers<[2], [1], [1], [2], [0, 0, 0, 1, 1, 2], [0], [0]>} : vector<2x8x4xf32>, vector<2x4x16xf32>, vector<2x8x16xf32> -> vector<2x8x16xf32>
    %11 = arith.addf %4, %10 : vector<2x8x16xf32>
    %c0_15 = arith.constant 0 : index
    %c0_16 = arith.constant 0 : index
    %c2_17 = arith.constant 2 : index
    %12 = vector.load %arg6[%c0_15, %c0_16, %c2_17] : memref<2x4x20xf32, #tpu.memory_space<vmem>>, vector<2x4x16xf32>
    %c1 = arith.constant 1 : index
    %c0_18 = arith.constant 0 : index
    %c0_19 = arith.constant 0 : index
    %13 = vector.load %arg1[%c1, %c0_18, %c0_19] : memref<3x8x4xf32, #tpu.memory_space<vmem>>, vector<1x8x4xf32>
    %14 = vector.shape_cast %13 : vector<1x8x4xf32> to vector<8x4xf32>
    %15 = vector.shape_cast %14 : vector<8x4xf32> to vector<1x8x4xf32>
    %16 = vector.broadcast %15 : vector<1x8x4xf32> to vector<2x8x4xf32>
    %cst_20 = arith.constant dense<0.000000e+00> : vector<2x8x16xf32>
    %17 = tpu.matmul %16, %12, %cst_20 {dimension_numbers = #tpu.dot_dimension_numbers<[2], [1], [1], [2], [0, 0, 0, 1, 1, 2], [0], [0]>} : vector<2x8x4xf32>, vector<2x4x16xf32>, vector<2x8x16xf32> -> vector<2x8x16xf32>
    %18 = arith.addf %11, %17 : vector<2x8x16xf32>
    %c0_21 = arith.constant 0 : index
    %c0_22 = arith.constant 0 : index
    %c4 = arith.constant 4 : index
    %19 = vector.load %arg6[%c0_21, %c0_22, %c4] : memref<2x4x20xf32, #tpu.memory_space<vmem>>, vector<2x4x16xf32>
    %c2_23 = arith.constant 2 : index
    %c0_24 = arith.constant 0 : index
    %c0_25 = arith.constant 0 : index
    %20 = vector.load %arg1[%c2_23, %c0_24, %c0_25] : memref<3x8x4xf32, #tpu.memory_space<vmem>>, vector<1x8x4xf32>
    %21 = vector.shape_cast %20 : vector<1x8x4xf32> to vector<8x4xf32>
    %22 = vector.shape_cast %21 : vector<8x4xf32> to vector<1x8x4xf32>
    %23 = vector.broadcast %22 : vector<1x8x4xf32> to vector<2x8x4xf32>
    %cst_26 = arith.constant dense<0.000000e+00> : vector<2x8x16xf32>
    %24 = tpu.matmul %23, %19, %cst_26 {dimension_numbers = #tpu.dot_dimension_numbers<[2], [1], [1], [2], [0, 0, 0, 1, 1, 2], [0], [0]>} : vector<2x8x4xf32>, vector<2x4x16xf32>, vector<2x8x16xf32> -> vector<2x8x16xf32>
    %25 = arith.addf %18, %24 : vector<2x8x16xf32>
    %c0_27 = arith.constant 0 : index
    %c0_28 = arith.constant 0 : index
    %c0_29 = arith.constant 0 : index
    %26 = vector.load %arg2[%c0_27, %c0_28, %c0_29] : memref<1x8x1xf32, #tpu.memory_space<vmem>>, vector<1x8x1xf32>
    %27 = vector.broadcast %26 : vector<1x8x1xf32> to vector<2x8x16xf32>
    %28 = arith.addf %25, %27 : vector<2x8x16xf32>
    %cst_30 = arith.constant dense<0.000000e+00> : vector<2x8xf32>
    %29 = vector.multi_reduction <add>, %28, %cst_30 [2] : vector<2x8x16xf32> to vector<2x8xf32>
    %30 = vector.shape_cast %29 : vector<2x8xf32> to vector<2x8x1xf32>
    %cst_31 = arith.constant dense<0.000000e+00> : vector<8x1xf32>
    %31 = vector.multi_reduction <add>, %30, %cst_31 [0] : vector<2x8x1xf32> to vector<8x1xf32>
    %32 = vector.shape_cast %31 : vector<8x1xf32> to vector<1x8x1xf32>
    %cst_32 = arith.constant 3.125000e-02 : f32
    %33 = vector.broadcast %cst_32 : f32 to vector<1x8x1xf32>
    %34 = arith.mulf %32, %33 : vector<1x8x1xf32>
    %35 = vector.broadcast %34 : vector<1x8x1xf32> to vector<2x8x16xf32>
    %36 = arith.subf %28, %35 : vector<2x8x16xf32>
    %37 = arith.mulf %36, %36 : vector<2x8x16xf32>
    %cst_33 = arith.constant dense<0.000000e+00> : vector<2x8xf32>
    %38 = vector.multi_reduction <add>, %37, %cst_33 [2] : vector<2x8x16xf32> to vector<2x8xf32>
    %39 = vector.shape_cast %38 : vector<2x8xf32> to vector<2x8x1xf32>
    %cst_34 = arith.constant dense<0.000000e+00> : vector<8x1xf32>
    %40 = vector.multi_reduction <add>, %39, %cst_34 [0] : vector<2x8x1xf32> to vector<8x1xf32>
    %41 = vector.shape_cast %40 : vector<8x1xf32> to vector<1x8x1xf32>
    %cst_35 = arith.constant 3.125000e-02 : f32
    %42 = vector.broadcast %cst_35 : f32 to vector<1x8x1xf32>
    %43 = arith.mulf %41, %42 : vector<1x8x1xf32>
    %c0_36 = arith.constant 0 : index
    %c0_37 = arith.constant 0 : index
    %c0_38 = arith.constant 0 : index
    %44 = vector.load %arg3[%c0_36, %c0_37, %c0_38] : memref<1x8x1xf32, #tpu.memory_space<vmem>>, vector<1x8x1xf32>
    %cst_39 = arith.constant 9.99999974E-6 : f32
    %45 = vector.broadcast %cst_39 : f32 to vector<1x8x1xf32>
    %46 = arith.addf %43, %45 : vector<1x8x1xf32>
    %47 = math.rsqrt %46 : vector<1x8x1xf32>
    %48 = arith.mulf %44, %47 : vector<1x8x1xf32>
    %c0_40 = arith.constant 0 : index
    %c0_41 = arith.constant 0 : index
    %c0_42 = arith.constant 0 : index
    %49 = vector.load %arg4[%c0_40, %c0_41, %c0_42] : memref<1x8x1xf32, #tpu.memory_space<vmem>>, vector<1x8x1xf32>
    %50 = arith.mulf %34, %48 : vector<1x8x1xf32>
    %51 = arith.subf %49, %50 : vector<1x8x1xf32>
    %52 = vector.broadcast %48 : vector<1x8x1xf32> to vector<2x8x16xf32>
    %53 = arith.mulf %28, %52 : vector<2x8x16xf32>
    %54 = vector.broadcast %51 : vector<1x8x1xf32> to vector<2x8x16xf32>
    %55 = arith.addf %53, %54 : vector<2x8x16xf32>
    %cst_43 = arith.constant 5.000000e-01 : f32
    %56 = vector.broadcast %cst_43 : f32 to vector<2x8x16xf32>
    %57 = arith.mulf %56, %55 : vector<2x8x16xf32>
    %cst_44 = arith.constant 0.707106769 : f32
    %58 = vector.broadcast %cst_44 : f32 to vector<2x8x16xf32>
    %59 = arith.mulf %55, %58 : vector<2x8x16xf32>
    %60 = math.absf %59 : vector<2x8x16xf32>
    %cst_45 = arith.constant 0.327591091 : f32
    %61 = vector.broadcast %cst_45 : f32 to vector<2x8x16xf32>
    %62 = arith.mulf %61, %60 : vector<2x8x16xf32>
    %cst_46 = arith.constant 1.000000e+00 : f32
    %63 = vector.broadcast %cst_46 : f32 to vector<2x8x16xf32>
    %64 = arith.addf %63, %62 : vector<2x8x16xf32>
    %cst_47 = arith.constant 1.000000e+00 : f32
    %65 = vector.broadcast %cst_47 : f32 to vector<2x8x16xf32>
    %66 = arith.divf %65, %64 : vector<2x8x16xf32>
    %cst_48 = arith.constant 1.06140542 : f32
    %67 = vector.broadcast %cst_48 : f32 to vector<2x8x16xf32>
    %68 = arith.mulf %67, %66 : vector<2x8x16xf32>
    %cst_49 = arith.constant -1.45315206 : f32
    %69 = vector.broadcast %cst_49 : f32 to vector<2x8x16xf32>
    %70 = arith.addf %68, %69 : vector<2x8x16xf32>
    %71 = arith.mulf %70, %66 : vector<2x8x16xf32>
    %cst_50 = arith.constant 1.42141378 : f32
    %72 = vector.broadcast %cst_50 : f32 to vector<2x8x16xf32>
    %73 = arith.addf %71, %72 : vector<2x8x16xf32>
    %74 = arith.mulf %73, %66 : vector<2x8x16xf32>
    %cst_51 = arith.constant -0.284496725 : f32
    %75 = vector.broadcast %cst_51 : f32 to vector<2x8x16xf32>
    %76 = arith.addf %74, %75 : vector<2x8x16xf32>
    %77 = arith.mulf %76, %66 : vector<2x8x16xf32>
    %cst_52 = arith.constant 0.254829586 : f32
    %78 = vector.broadcast %cst_52 : f32 to vector<2x8x16xf32>
    %79 = arith.addf %77, %78 : vector<2x8x16xf32>
    %80 = arith.mulf %79, %66 : vector<2x8x16xf32>
    %cst_53 = arith.constant 0.000000e+00 : f32
    %81 = vector.broadcast %cst_53 : f32 to vector<2x8x16xf32>
    %82 = arith.subf %81, %60 : vector<2x8x16xf32>
    %83 = arith.mulf %82, %60 : vector<2x8x16xf32>
    %84 = math.exp %83 : vector<2x8x16xf32>
    %85 = arith.mulf %80, %84 : vector<2x8x16xf32>
    %cst_54 = arith.constant 1.000000e+00 : f32
    %86 = vector.broadcast %cst_54 : f32 to vector<2x8x16xf32>
    %87 = arith.subf %86, %85 : vector<2x8x16xf32>
    %cst_55 = arith.constant 0.000000e+00 : f32
    %88 = vector.broadcast %cst_55 : f32 to vector<2x8x16xf32>
    %89 = arith.cmpf oge, %59, %88 : vector<2x8x16xf32>
    %cst_56 = arith.constant 0.000000e+00 : f32
    %90 = vector.broadcast %cst_56 : f32 to vector<2x8x16xf32>
    %91 = arith.subf %90, %87 : vector<2x8x16xf32>
    %92 = arith.select %89, %87, %91 : vector<2x8x16xi1>, vector<2x8x16xf32>
    %cst_57 = arith.constant 1.000000e+00 : f32
    %93 = vector.broadcast %cst_57 : f32 to vector<2x8x16xf32>
    %94 = arith.addf %93, %92 : vector<2x8x16xf32>
    %95 = arith.mulf %57, %94 : vector<2x8x16xf32>
    %c0_58 = arith.constant 0 : index
    %c0_59 = arith.constant 0 : index
    %c0_60 = arith.constant 0 : index
    %96 = vector.load %arg5[%c0_58, %c0_59, %c0_60] : memref<2x8x16xf32, #tpu.memory_space<vmem>>, vector<2x8x16xf32>
    tpu.vector_store %arg5[%c0_58, %c0_59, %c0_60], %95 {strides = array<i32>} : memref<2x8x16xf32, #tpu.memory_space<vmem>>, vector<2x8x16xf32>,
    return
  }
}

</mosaic_0001>

<bundles_post_ra>
// kernel: tpu_custom_call.1
= control target key start
LH: loop header
LB: loop body
LE: loop exit
PB: predicated region body
PF: predicated region fallthrough
CT: control target
= control target key end

     0   :  { %s720_s20 = smov 2   ;;  %vm21_vm0 = vcmask 158720   ;;  %s810_s0 = inlined_call_operand.vmem [shape: f32[2,4,16], index: 0, kind: input, shape index: {}]   ;;  %s811_s1 = inlined_call_operand.vmem [shape: f32[3,8,4], index: 1, kind: input, shape index: {}]   ;;  %s812_s2 = inlined_call_operand.vmem [shape: f32[1,8,1], index: 2, kind: input, shape index: {}]   ;;  %s813_s3 = inlined_call_operand.vmem [shape: f32[1,8,1], index: 3, kind: input, shape index: {}]   ;;  %s814_s4 = inlined_call_operand.vmem [shape: f32[1,8,1], index: 4, kind: input, shape index: {}]   ;;  %s815_s5 = inlined_call_operand.hbm [shape: f32[2,8,16], index: 5, kind: output, shape index: {}]  }
   0x1   :  { %v24_v0 = vld [vmem:[%s810_s0] sm:$0xf] }
   0x2   :  { %28 = vrot.lane.b32.xlu0 %v24_v0, %s720_s20 }
   0x3   :  { %10 = vsyncpa [#allocation4], 0  ;;  %v25_v1 = vld [vmem:[%s810_s0 + $0x4] sm:$0xf]  ;;  %v721_v2 = vmov 0.0   ;;  %vm722_vm1 = vmmov 0  }
   0x4   :  { %22 = vst.msk [vmem:[#allocation2] sm:$0xf] %vm21_vm0, %v721_v2  ;;  %23 = vst.msk [vmem:[#allocation2 + $0x4] sm:$0xf] %vm21_vm0, %v721_v2  ;;  %647 = vmatprep.subr.mxu0 %v721_v2  ;;  %652 = vmatprep.subr.mxu1 %v721_v2  ;;  %vm34_vm2 = vcmask 142352   ;;  %s723_s23 = smov 124  }
   0x5   :  { %649 = vmatprep.mubr.msk.f32.mxu0 %vm722_vm1, %v721_v2  ;;  %654 = vmatprep.mubr.msk.f32.mxu1 %vm722_vm1, %v721_v2  ;;  %s724_s0 = smov 126   ;;  %v725_v6 = vmov 0   ;;  %v499_v7 = vld [vmem:[%s812_s2] sm:$0xff]  ;;  %vm49_vm3 = vcmask 1043456   ;;  %v621_v9 = vld [vmem:[%s811_s1 + $0x8] sm:$0xff]  ;;  %vm45_vm4 = vcmask 31744  }
   0x6   :  { %30 = vrot.lane.b32.xlu0 %v25_v1, %s720_s20  ;;  %687 = vset.pattern.permute.xlu1 %v725_v6  ;;  %v39_v11 = vld [vmem:[%s811_s1] sm:$0xff]  ;;  %v630_v14 = vld [vmem:[%s811_s1 + $0x10] sm:$0xff]  ;;  %vm507_vm5 = vcmask 130048  }
   0x7   :  { %686 = vset.pattern.permute.xlu0 %v725_v6  ;;  %v528_v52 = vld [vmem:[%s813_s3] sm:$0xff]  ;;  %s726_s3 = smov [#allocation3]  }
   0x8   :  { %v532_v55 = vld [vmem:[%s814_s4] sm:$0xff]  ;;  %s610_s4 = sshll.u32 %s726_s3, 4  ;;  %s611_s4 = int_to_ptr.vmem [resolvable:$true] %s610_s4 }
   0x9   :  { %s698_s9 = scalar_lea.vmem %s611_s4, 256  ;;  %p703_p1 = scmp.lt.s32.totalorder %s611_s4, %s611_s4 }
   0xa   :  { %p699_p0 = scmp.ne.s32.totalorder %s611_s4, %s698_s9  ;;  %p704_p2 = scmp.lt.s32.totalorder %s698_s9, %s698_s9 }
   0xc   :  { %p705_p3 = por %p704_p2, %p703_p1 }
   0xe   :  { %p706_p4 = pnand %p705_p3, %p699_p0 }
  0x74   :  { %v29_v3 = vpop.permute.xlu0 %28 }
  0x75   :  { %35 = vst.msk [vmem:[#allocation2] sm:$0xf] %vm34_vm2, %v29_v3 }
  0x78   :  { %v31_v4 = vpop.permute.xlu0 %30 }
  0x79   :  { %36 = vst.msk [vmem:[#allocation2 + $0x4] sm:$0xf] %vm34_vm2, %v31_v4 }
  0x7c   :  { %v37_v5 = vld [vmem:[#allocation2] sm:$0xf] }
  0x7d   :  { %346 = vrot.lane.b32.xlu0 %v37_v5, %s723_s23  ;;  %43 = vrot.lane.b32.xlu1 %v37_v5, %s724_s0 }
  0x80   :  { %v38_v8 = vld [vmem:[#allocation2 + $0x4] sm:$0xf] }
  0x81   :  { %123 = vrot.lane.b32.xlu1 %v38_v8, %s724_s0  ;;  %502 = vperm.xlu0 %686, %v499_v7  }
  0x85   :  { %423 = vrot.lane.b32.xlu1 %v38_v8, %s723_s23 }
  0xef   :  { %v44_v10 = vpop.permute.xlu1 %43  ;;  %v347_v13 = vpop.permute.xlu0 %346 }
  0xf0   :  { %648 = vmatpush3.msk.msra.mxu0 %vm49_vm3, %v44_v10 }
  0xf1   :  { %650 = vmatmul.mubr.msk.f32.vlgmr.msra.gmra.mxu0 %vm45_vm4, %v621_v9  ;;  %657 = vmatprep.subr.mxu0 %v721_v2 }
  0xf2   :  { %658 = vmatpush3.msk.msra.mxu0 %vm49_vm3, %v37_v5  ;;  %659 = vmatprep.mubr.msk.f32.mxu0 %vm722_vm1, %v721_v2 }
  0xf3   :  { %v124_v12 = vpop.permute.xlu1 %123  ;;  %667 = vmatprep.subr.mxu0 %v721_v2 }
  0xf4   :  { %653 = vmatpush3.msk.msra.mxu1 %vm49_vm3, %v124_v12 }
  0xf5   :  { %655 = vmatmul.mubr.msk.f32.vlgmr.msra.gmra.mxu1 %vm45_vm4, %v621_v9  ;;  %660 = vmatmul.mubr.msk.f32.vlgmr.msra.gmra.mxu0 %vm45_vm4, %v39_v11 }
  0xf6   :  { %662 = vmatprep.subr.mxu1 %v721_v2  ;;  %668 = vmatpush3.msk.msra.mxu0 %vm49_vm3, %v347_v13 }
  0xf7   :  { %663 = vmatpush3.msk.msra.mxu1 %vm49_vm3, %v38_v8  ;;  %v424_v15 = vpop.permute.xlu1 %423  ;;  %664 = vmatprep.mubr.msk.f32.mxu1 %vm722_vm1, %v721_v2 }
  0xf8   :  { %669 = vmatprep.mubr.msk.f32.mxu0 %vm722_vm1, %v721_v2  ;;  %672 = vmatprep.subr.mxu1 %v721_v2 }
  0xf9   :  { %665 = vmatmul.mubr.msk.f32.vlgmr.msra.gmra.mxu1 %vm45_vm4, %v39_v11  ;;  %670 = vmatmul.mubr.msk.f32.vlgmr.msra.gmra.mxu0 %vm45_vm4, %v630_v14 }
  0xfa   :  { %673 = vmatpush3.msk.msra.mxu1 %vm49_vm3, %v424_v15  ;;  %674 = vmatprep.mubr.msk.f32.mxu1 %vm722_vm1, %v721_v2 }
  0xfc   :  { %v503_v23 = vpop.permute.xlu0 %502 }
  0xfd   :  { %675 = vmatmul.mubr.msk.f32.vlgmr.msra.gmra.mxu1 %vm45_vm4, %v630_v14 }
 0x1b1   :  { %v118_v16 = vpop.f32.mrf.mxu0 }
 0x1b3   :  { %v651_v17 = vpop.f32.mrf.mxu0 }
 0x1b5   :  { %v193_v18 = vpop.f32.mrf.mxu1  ;;  %v268_v19 = vpop.f32.mrf.mxu0 }
 0x1b6   :  { %v269_v22 = vadd.f32 %v268_v19, %v118_v16 }
 0x1b7   :  { %v656_v20 = vpop.f32.mrf.mxu1  ;;  %v661_v21 = vpop.f32.mrf.mxu0 }
 0x1b9   :  { %v340_v24 = vpop.f32.mrf.mxu1  ;;  %v419_v25 = vpop.f32.mrf.mxu0 }
 0x1ba   :  { %v497_v26 = vadd.f32 %v419_v25, %v269_v22  ;;  %v341_v29 = vadd.f32 %v340_v24, %v193_v18 }
 0x1bb   :  { %v666_v27 = vpop.f32.mrf.mxu1  ;;  %v671_v28 = vpop.f32.mrf.mxu0 }
 0x1bc   :  { %v505_v30 = vadd.f32 %v503_v23, %v497_v26 }
 0x1bd   :  { %v493_v31 = vpop.f32.mrf.mxu1 }
 0x1be   :  { %v498_v32 = vadd.f32 %v493_v31, %v341_v29  ;;  %v508_v33 = vsel %vm507_vm5, %v505_v30, 0.0 }
 0x1bf   :  { %509 = vadd.xlane.f32.xlu1 %v508_v33  ;;  %v676_v34 = vpop.f32.mrf.mxu1 }
 0x1c0   :  { %v506_v35 = vadd.f32 %v503_v23, %v498_v32 }
 0x1c2   :  { %v511_v36 = vsel %vm507_vm5, %v506_v35, 0.0 }
 0x1c3   :  { %512 = vadd.xlane.f32.xlu0 %v511_v36 }
 0x248   :  { %v510_v37 = vpop.xlane.xlu1 %509 }
 0x24c   :  { %v513_v38 = vpop.xlane.xlu0 %512 }
 0x24d   :  { %v514_v39 = vadd.f32 %v513_v38, %v510_v37 }
 0x24f   :  { %v515_v40 = vmul.f32 0.03125, %v514_v39 }
 0x251   :  { %v517_v41 = vsub.f32 %v506_v35, %v515_v40  ;;  %v516_v42 = vsub.f32 %v505_v30, %v515_v40 }
 0x253   :  { %v519_v43 = vmul.f32 %v517_v41, %v517_v41  ;;  %v518_v44 = vmul.f32 %v516_v42, %v516_v42 }
 0x255   :  { %v523_v45 = vsel %vm507_vm5, %v519_v43, 0.0  ;;  %v520_v46 = vsel %vm507_vm5, %v518_v44, 0.0 }
 0x256   :  { %524 = vadd.xlane.f32.xlu0 %v523_v45  ;;  %521 = vadd.xlane.f32.xlu1 %v520_v46 }
 0x2df   :  { %v525_v47 = vpop.xlane.xlu0 %524  ;;  %v522_v48 = vpop.xlane.xlu1 %521 }
 0x2e0   :  { %v526_v49 = vadd.f32 %v525_v47, %v522_v48 }
 0x2e2   :  { %v527_v50 = vmul.f32 0.03125, %v526_v49 }
 0x2e4   :  { %v529_v51 = vadd.f32 1e-05, %v527_v50 }
 0x2e6   :  { %688 = vrsqrt.f32 %v529_v51 }
 0x2f3   :  { %v689_v53 = vpop.eup %688 }
 0x2f4   :  { %v531_v54 = vmul.f32 %v689_v53, %v528_v52 }
 0x2f6   :  { %537 = vperm.xlu1 %687, %v531_v54   ;;  %v533_v56 = vmul.f32 %v531_v54, %v515_v40 }
 0x2f8   :  { %v534_v57 = vsub.f32 %v532_v55, %v533_v56 }
 0x2fa   :  { %544 = vperm.xlu0 %686, %v534_v57  }
 0x371   :  { %v538_v58 = vpop.permute.xlu1 %537 }
 0x372   :  { %v540_v59 = vmul.f32 %v538_v58, %v505_v30  ;;  %v541_v60 = vmul.f32 %v538_v58, %v506_v35 }
 0x375   :  { %v545_v61 = vpop.permute.xlu0 %544 }
 0x376   :  { %v547_v62 = vadd.f32 %v545_v61, %v540_v59  ;;  %v548_v63 = vadd.f32 %v545_v61, %v541_v60 }
 0x378   :  { %v551_v0 = vmul.f32 0.70710677, %v547_v62  ;;  %v552_v1 = vmul.f32 0.70710677, %v548_v63  ;;  %v549_v43 = vmul.f32 0.5, %v547_v62  ;;  %v550_v46 = vmul.f32 0.5, %v548_v63 }
 0x37a   :  { %v553_v2 = vand.u32 2147483647, %v551_v0  ;;  %v554_v3 = vand.u32 2147483647, %v552_v1  ;;  %vm593_vm6 = vcmp.ge.f32.partialorder %v551_v0, 0.0  ;;  %vm594_vm7 = vcmp.ge.f32.partialorder %v552_v1, 0.0 }
 0x37c   :  { %v555_v4 = vmul.f32 0.3275911, %v553_v2  ;;  %v556_v5 = vmul.f32 0.3275911, %v554_v3  ;;  %v581_v8 = vsub.f32 0.0, %v553_v2  ;;  %v582_v9 = vsub.f32 0.0, %v554_v3 }
 0x37e   :  { %v557_v6 = vadd.f32 1.0, %v555_v4  ;;  %v558_v7 = vadd.f32 1.0, %v556_v5  ;;  %v583_v10 = vmul.f32 %v581_v8, %v553_v2  ;;  %v584_v11 = vmul.f32 %v582_v9, %v554_v3 }
 0x380   :  { %690 = vrcp.f32 %v557_v6  ;;  %v585_v15 = vmul.f32 1.442695, %v583_v10  ;;  %v587_v17 = vmul.f32 1.442695, %v584_v11 }
 0x381   :  { %692 = vrcp.f32 %v558_v7 }
 0x382   :  { %694 = vpow2.f32 %v585_v15 }
 0x383   :  { %696 = vpow2.f32 %v587_v17 }
 0x38d   :  { %v691_v12 = vpop.eup %690 }
 0x38e   :  { %v693_v13 = vpop.eup %692  ;;  %v563_v14 = vmul.f32 1.0614054, %v691_v12 }
 0x38f   :  { %v564_v16 = vmul.f32 1.0614054, %v693_v13  ;;  %v695_v33 = vpop.eup %694 }
 0x390   :  { %v565_v18 = vadd.f32 -1.4531521, %v563_v14  ;;  %v697_v35 = vpop.eup %696 }
 0x391   :  { %v566_v19 = vadd.f32 -1.4531521, %v564_v16 }
 0x392   :  { %v567_v20 = vmul.f32 %v691_v12, %v565_v18 }
 0x393   :  { %v568_v21 = vmul.f32 %v693_v13, %v566_v19 }
 0x394   :  { %v569_v22 = vadd.f32 1.4214138, %v567_v20 }
 0x395   :  { %v570_v23 = vadd.f32 1.4214138, %v568_v21 }
 0x396   :  { %v571_v24 = vmul.f32 %v691_v12, %v569_v22 }
 0x397   :  { %v572_v25 = vmul.f32 %v693_v13, %v570_v23 }
 0x398   :  { %v573_v26 = vadd.f32 -0.28449672, %v571_v24 }
 0x399   :  { %v574_v27 = vadd.f32 -0.28449672, %v572_v25 }
 0x39a   :  { %v575_v28 = vmul.f32 %v691_v12, %v573_v26 }
 0x39b   :  { %v576_v29 = vmul.f32 %v693_v13, %v574_v27 }
 0x39c   :  { %v577_v30 = vadd.f32 0.2548296, %v575_v28 }
 0x39d   :  { %v578_v31 = vadd.f32 0.2548296, %v576_v29 }
 0x39e   :  { %v579_v32 = vmul.f32 %v691_v12, %v577_v30 }
 0x39f   :  { %v580_v34 = vmul.f32 %v693_v13, %v578_v31 }
 0x3a0   :  { %v589_v36 = vmul.f32 %v695_v33, %v579_v32 }
 0x3a1   :  { %v590_v37 = vmul.f32 %v697_v35, %v580_v34 }
 0x3a2   :  { %v591_v38 = vsub.f32 1.0, %v589_v36 }
 0x3a3   :  { %v592_v39 = vsub.f32 1.0, %v590_v37 }
 0x3a4   :  { %v595_v40 = vsub.f32 0.0, %v591_v38 }
 0x3a5   :  { %v596_v41 = vsub.f32 0.0, %v592_v39 }
 0x3a6   :  { %v597_v42 = vsel %vm593_vm6, %v591_v38, %v595_v40 }
 0x3a7   :  { %v598_v44 = vsel %vm594_vm7, %v592_v39, %v596_v41  ;;  %v599_v45 = vadd.f32 1.0, %v597_v42 }
 0x3a8   :  { %v600_v47 = vadd.f32 1.0, %v598_v44 }
 0x3a9   :  { %v601_v48 = vmul.f32 %v599_v45, %v549_v43 }
 0x3aa   :  { %v602_v49 = vmul.f32 %v600_v47, %v550_v46 }
 0x3ab   :  { %603 = vst.msk [vmem:[#allocation3] sm:$0xff] %vm507_vm5, %v601_v48 }
 0x3ac   :  { %604 = vst.msk [vmem:[#allocation3 + $0x8] sm:$0xff] %vm507_vm5, %v602_v49 }
 0x3ad   :  { %709 = shalt.err (!%p706_p4)
}
 0x3ae   :  { %s727_s10 = smov 128   ;;  %s728_s11 = smov 8  }
 0x3af   :  { %616 = dma.vmem_to_hbm [thread:$0]  %s611_s4, 256, %s815_s5, [#allocation4], %s727_s10, %s727_s10, %s728_s11  }
 0x3b0   :  { %718 = dma.done.wait [#allocation4], 256  }
 0x3b1   :  { %719 = vsyncadd [#allocation4], 4294967040 }
 0x3b2   :  { %620 = vsyncpa [#allocation4], 1 }

</bundles_post_ra>
